<compile_context>
chip_gen: v7x
topology: tpu7x:2x2x1
jax: 0.10.0
libtpu: 0.0.40
codegen_flags: <defaults>
</compile_context>

<pallas_src>
import functools
import math

import jax
import jax.numpy as jnp
from jax.experimental import pallas as pl
from jax.experimental.pallas import tpu as pltpu


def _round_up(a, b):
    return (a + b - 1) // b * b


# ---------------------------------------------------------------------------
# Kernel 1: Lorentz linear layer (matmul + bias + hyperboloid head), tiled on N
# ---------------------------------------------------------------------------
def _lorentz_linear_kernel(c, x_ref, wt_ref, b_ref, h_ref):
    # x: (TM, F_in), wt: (F_in, F_out) with column 0 zeroed, b: (1, F_out).
    mv = jnp.dot(x_ref[...], wt_ref[...], preferred_element_type=jnp.float32)
    mv = mv + b_ref[...]                                 # column 0 stays exactly 0
    # ||tail||^2 (column 0 contributes 0) and hyperboloid head
    #   -x0^2 + ||tail||^2 = -c  =>  x0 = sqrt(c + ||tail||^2)
    sumsq = jnp.sum(mv * mv, axis=-1, keepdims=True)     # f32 on VPU
    head = jnp.sqrt(c + sumsq)
    lane = jax.lax.broadcasted_iota(jnp.int32, mv.shape, 1)
    h_ref[...] = jnp.where(lane == 0, head, mv)          # head in col 0, tail in 1:


def lorentz_linear(x, weight, bias, c, *, matmul_dtype=jnp.float32,
                   block_rows=1024):
    """LorentzLinear.forward (dropout disabled / eval mode). Returns (N, F+1)."""
    n, f_in = x.shape
    f_out = weight.shape[0] + 1                      # in_features + 1

    # Glue: zero-pad a transposed weight so the MXU writes the tail directly
    # into columns 1: of the output block (column 0 reserved for the head).
    wt_pad = jnp.zeros((f_in, f_out), jnp.float32).at[:, 1:].set(weight.T)
    b_pad = jnp.zeros((1, f_out), jnp.float32).at[:, 1:].set(bias.reshape(1, -1))

    tm = min(block_rows, _round_up(max(n, 1), 16))   # multiple of 16 (bf16-safe)
    n_pad = _round_up(max(n, 1), tm)
    xp = x if n_pad == n else jnp.pad(x, ((0, n_pad - n), (0, 0)))
    xp = xp.astype(matmul_dtype)                     # bf16 option for v6e/v7x
    wt_pad = wt_pad.astype(matmul_dtype)             # bias/head math stays f32

    itemsize = jnp.dtype(matmul_dtype).itemsize
    cost = pl.CostEstimate(
        flops=2 * n_pad * f_in * f_out + 4 * n_pad * f_out,
        transcendentals=n_pad,                       # sqrt per row
        bytes_accessed=(n_pad * f_in + f_in * f_out) * itemsize
        + (f_out + n_pad * f_out) * 4,
    )

    h = pl.pallas_call(
        functools.partial(_lorentz_linear_kernel, float(c)),
        grid=(n_pad // tm,),
        in_specs=[
            pl.BlockSpec((tm, f_in), lambda i: (i, 0)),
            pl.BlockSpec((f_in, f_out), lambda i: (0, 0)),   # resident weight
            pl.BlockSpec((1, f_out), lambda i: (0, 0)),      # resident bias
        ],
        out_specs=pl.BlockSpec((tm, f_out), lambda i: (i, 0)),
        out_shape=jax.ShapeDtypeStruct((n_pad, f_out), jnp.float32),
        compiler_params=pltpu.CompilerParams(dimension_semantics=("parallel",)),
        cost_estimate=cost,
    )(xp, wt_pad, b_pad)
    return h if n_pad == n else h[:n]


# ---------------------------------------------------------------------------
# Kernel 2: per-edge squared Lorentzian distance attention weights, tiled on E
# ---------------------------------------------------------------------------
def _sq_dis_att_kernel(c, d, x_ref, y_ref, out_ref):
    # x, y: (TE, F_out) gathered endpoint rows; features on lanes.
    x = x_ref[...]
    y = y_ref[...]
    lane = jax.lax.broadcasted_iota(jnp.int32, x.shape, 1)
    # Minkowski signature with the unused trailing tail column zeroed:
    #   sig = [-1, +1 x d, 0]
    sig = jnp.where(lane == 0, -1.0, jnp.where(lane <= d, 1.0, 0.0))
    l_inner = jnp.sum(sig * x * y, axis=-1, keepdims=True)       # (TE, 1)
    res = jnp.clip(-(c + l_inner), 1e-10, 1.0)
    out_ref[...] = jnp.exp(-res)


def lorentz_sparse_sq_dis_att(x, adj_indices, adj_size, weight, bias, c, *,
                              matmul_dtype=jnp.float32, block_edges=2048):
    """Forward pass of LorentzSparseSqDisAtt. Returns (index, res, adj_size)."""
    n, f = x.shape
    d = f - 1                                        # exactly as in the torch module
    f_out = f + 1

    h = lorentz_linear(x, weight, bias, c, matmul_dtype=matmul_dtype)  # (N, F+1)

    # --- edge-endpoint gather (XLA gather; see TODO at top of file) ----------
    src = adj_indices[0].astype(jnp.int32)
    dst = adj_indices[1].astype(jnp.int32)
    e = src.shape[0]
    te = min(block_edges, _round_up(max(e, 1), 128))
    e_pad = _round_up(max(e, 1), te)
    if e_pad != e:
        src = jnp.pad(src, (0, e_pad - e))           # pad with valid index 0
        dst = jnp.pad(dst, (0, e_pad - e))
    xg = jnp.take(h, src, axis=0)                    # (E_pad, F+1)
    yg = jnp.take(h, dst, axis=0)                    # (E_pad, F+1)

    cost = pl.CostEstimate(
        flops=3 * e_pad * f_out + 4 * e_pad,
        transcendentals=e_pad,                       # exp per edge
        bytes_accessed=(2 * e_pad * f_out + e_pad) * 4,
    )

    res = pl.pallas_call(
        functools.partial(_sq_dis_att_kernel, float(c), int(d)),
        grid=(e_pad // te,),
        in_specs=[
            pl.BlockSpec((te, f_out), lambda i: (i, 0)),
            pl.BlockSpec((te, f_out), lambda i: (i, 0)),
        ],
        out_specs=pl.BlockSpec((te, 1), lambda i: (i, 0)),
        out_shape=jax.ShapeDtypeStruct((e_pad, 1), jnp.float32),
        compiler_params=pltpu.CompilerParams(dimension_semantics=("parallel",)),
        cost_estimate=cost,
    )(xg, yg)

    return adj_indices, res[:e, 0], adj_size


# ---------------------------------------------------------------------------
# Deterministic parameter init (matches module __init__ shapes)
# ---------------------------------------------------------------------------
def init_params(key, in_features):
    out_features = in_features + 1
    # xavier_uniform_ with gain sqrt(2): bound = gain*sqrt(6/(fan_in+fan_out))
    fan_in, fan_out = in_features, out_features - 1
    bound = math.sqrt(2.0) * math.sqrt(6.0 / (fan_in + fan_out))
    weight = jax.random.uniform(
        key, (out_features - 1, in_features), jnp.float32, -bound, bound)
    bias = jnp.zeros((out_features - 1,), jnp.float32)
    return weight, bias


def reference_forward(x, adj_indices, weight, bias, c):
    """Pure-JAX reference for correctness checking."""
    d = x.shape[1] - 1
    tail = x @ weight.T + bias
    head = jnp.sqrt(c + jnp.sum(tail * tail, axis=-1, keepdims=True))
    h = jnp.concatenate([head, tail], axis=1)
    _x, _y = h[adj_indices[0]], h[adj_indices[1]]
    l_inner = (-jnp.sum(_x[:, 0:1] * _y[:, 0:1], -1)
               + jnp.sum(_x[:, 1:1 + d] * _y[:, 1:1 + d], -1))
    return jnp.exp(-jnp.clip(-(c + l_inner), 1e-10, 1.0))


if __name__ == "__main__":
    key = jax.random.PRNGKey(0)
    k_x, k_w, k_e = jax.random.split(key, 3)

    N = 8            # number of graph nodes
    F = 16           # in_features (ambient Lorentz dim: 1 head + F-1 tail)
    E = 24           # number of sparse adjacency entries (edges)
    c = 1.0

    # Deterministic input living on the hyperboloid -x0^2 + ||tail||^2 = -c.
    x_tail = 0.1 * jax.random.normal(k_x, (N, F - 1), jnp.float32)
    x_head = jnp.sqrt(c + jnp.sum(x_tail * x_tail, axis=-1, keepdims=True))
    x = jnp.concatenate([x_head, x_tail], axis=1)        # (N, F)

    # Sparse adjacency as COO indices (equivalent of adj._indices()/adj.size()).
    adj_indices = jax.random.randint(k_e, (2, E), 0, N, dtype=jnp.int32)
    adj_size = (N, N)

    weight, bias = init_params(k_w, F)

    index_out, res, size_out = lorentz_sparse_sq_dis_att(
        x, adj_indices, adj_size, weight, bias, c)
    jax.block_until_ready(res)

    ref = reference_forward(x, adj_indices, weight, bias, c)
    assert res.shape == (E,)
    assert size_out == (N, N)
    assert jnp.allclose(res, ref, rtol=1e-5, atol=1e-5), "mismatch vs reference"

    print("KERNEL_OK")
</pallas_src>

<mosaic_0001>
module attributes {stable_mosaic.version = 11 : i64} {
  func.func @_lorentz_linear_kernel(%arg0: i32, %arg1: memref<16x16xf32, #tpu.memory_space<vmem>>, %arg2: memref<16x17xf32, #tpu.memory_space<vmem>>, %arg3: memref<1x17xf32, #tpu.memory_space<vmem>>, %arg4: memref<16x17xf32, #tpu.memory_space<vmem>>) attributes {dimension_semantics = [#tpu.dimension_semantics<parallel>], iteration_bounds = array<i64: 1>, scalar_prefetch = 0 : i64, scratch_operands = 0 : i64, tpu.core_type = #tpu.core_type<tc>, window_params = [{transform_indices = @transform_0, window_bounds = array<i64: 16, 16>}, {pipeline_mode = #tpu.pipeline_mode<synchronous>, transform_indices = @transform_1, window_bounds = array<i64: 16, 17>}, {pipeline_mode = #tpu.pipeline_mode<synchronous>, transform_indices = @transform_2, window_bounds = array<i64: 1, 17>}, {transform_indices = @transform_3, window_bounds = array<i64: 16, 17>}]} {
    %c0 = arith.constant 0 : index
    %c0_0 = arith.constant 0 : index
    %0 = vector.load %arg1[%c0, %c0_0] : memref<16x16xf32, #tpu.memory_space<vmem>>, vector<16x16xf32>
    %c0_1 = arith.constant 0 : index
    %c0_2 = arith.constant 0 : index
    %1 = vector.load %arg2[%c0_1, %c0_2] : memref<16x17xf32, #tpu.memory_space<vmem>>, vector<16x17xf32>
    %cst = arith.constant dense<0.000000e+00> : vector<16x17xf32>
    %2 = tpu.matmul %0, %1, %cst {dimension_numbers = #tpu.dot_dimension_numbers<[1], [0], [0], [1], [0, 0, 1, 1], [], []>} : vector<16x16xf32>, vector<16x17xf32>, vector<16x17xf32> -> vector<16x17xf32>
    %c0_3 = arith.constant 0 : index
    %c0_4 = arith.constant 0 : index
    %3 = vector.load %arg3[%c0_3, %c0_4] : memref<1x17xf32, #tpu.memory_space<vmem>>, vector<1x17xf32>
    %4 = vector.broadcast %3 : vector<1x17xf32> to vector<16x17xf32>
    %5 = arith.addf %2, %4 : vector<16x17xf32>
    %6 = arith.mulf %5, %5 : vector<16x17xf32>
    %cst_5 = arith.constant dense<0.000000e+00> : vector<16xf32>
    %7 = vector.multi_reduction <add>, %6, %cst_5 [1] : vector<16x17xf32> to vector<16xf32>
    %8 = vector.shape_cast %7 : vector<16xf32> to vector<16x1xf32>
    %cst_6 = arith.constant 1.000000e+00 : f32
    %9 = vector.broadcast %cst_6 : f32 to vector<16x1xf32>
    %10 = arith.addf %9, %8 : vector<16x1xf32>
    %11 = math.sqrt %10 : vector<16x1xf32>
    %12 = tpu.iota {dimensions = array<i32: 1>} : vector<16x17xi32>
    %c0_i32 = arith.constant 0 : i32
    %13 = vector.broadcast %c0_i32 : i32 to vector<16x17xi32>
    %14 = arith.cmpi eq, %12, %13 : vector<16x17xi32>
    %15 = vector.shape_cast %11 : vector<16x1xf32> to vector<16x1xf32>
    %16 = vector.broadcast %15 : vector<16x1xf32> to vector<16x17xf32>
    %17 = arith.select %14, %16, %5 : vector<16x17xi1>, vector<16x17xf32>
    %c0_7 = arith.constant 0 : index
    %c0_8 = arith.constant 0 : index
    %18 = vector.load %arg4[%c0_7, %c0_8] : memref<16x17xf32, #tpu.memory_space<vmem>>, vector<16x17xf32>
    tpu.vector_store %arg4[%c0_7, %c0_8], %17 {strides = array<i32>} : memref<16x17xf32, #tpu.memory_space<vmem>>, vector<16x17xf32>,
    return
  }
  func.func @transform_0(%arg0: i32) -> (i32, i32) {
    %c0_i32 = arith.constant 0 : i32
    %c0_i32_0 = arith.constant 0 : i32
    return %arg0, %c0_i32 : i32, i32
  }
  func.func @transform_1(%arg0: i32) -> (i32, i32) {
    %c0_i32 = arith.constant 0 : i32
    %c0_i32_0 = arith.constant 0 : i32
    %c0_i32_1 = arith.constant 0 : i32
    return %c0_i32, %c0_i32_0 : i32, i32
  }
  func.func @transform_2(%arg0: i32) -> (i32, i32) {
    %c0_i32 = arith.constant 0 : i32
    %c0_i32_0 = arith.constant 0 : i32
    %c0_i32_1 = arith.constant 0 : i32
    return %c0_i32, %c0_i32_0 : i32, i32
  }
  func.func @transform_3(%arg0: i32) -> (i32, i32) {
    %c0_i32 = arith.constant 0 : i32
    %c0_i32_0 = arith.constant 0 : i32
    return %arg0, %c0_i32 : i32, i32
  }
}

</mosaic_0001>

<bundles_post_ra>
// kernel: tpu_custom_call.1
= control target key start
LH: loop header
LB: loop body
LE: loop exit
PB: predicated region body
PF: predicated region fallthrough
CT: control target
= control target key end

     0   :  { %8 = vsyncpa [#allocation3], 0  ;;  %s364_s0 = inlined_call_operand.hbm [shape: f32[16,16], index: 0, kind: input, shape index: {}]   ;;  %s365_s1 = inlined_call_operand.hbm [shape: f32[16,17], index: 1, kind: input, shape index: {}]   ;;  %s366_s2 = inlined_call_operand.vmem [shape: f32[1,17], index: 2, kind: input, shape index: {}]   ;;  %s367_s3 = inlined_call_operand.hbm [shape: f32[16,17], index: 3, kind: output, shape index: {}]  }
   0x1   :  { %9 = vsyncpa [#allocation6], 0 }
   0x2   :  { %10 = vsyncpa [#allocation4], 0  ;;  %s285_s12 = smov [#allocation2]   ;;  %s213_s16 = scalar_lea.hbm %s364_s0, 256 }
   0x3   :  { %s16_s13 = sshll.u32 %s285_s12, 4  ;;  %p214_p0 = scmp.ne.s32.totalorder %s364_s0, %s213_s16  ;;  %s17_s13 = int_to_ptr.vmem [resolvable:$true] %s16_s13 }
   0x4   :  { %p217_p1 = scmp.lt.u32.totalorder %s213_s16, %s364_s0 }
   0x6   :  { %p219_p2 = pnand %p217_p1, %p214_p0 }
   0x8   :  { %222 = shalt.err (!%p219_p2)
}
   0x9   :  { %s223_s21 = scalar_lea.vmem %s17_s13, 256  ;;  %p228_p4 = scmp.lt.s32.totalorder %s17_s13, %s17_s13 }
   0xa   :  { %p224_p3 = scmp.ne.s32.totalorder %s17_s13, %s223_s21  ;;  %p229_p5 = scmp.lt.s32.totalorder %s223_s21, %s223_s21 }
   0xc   :  { %p230_p6 = por %p229_p5, %p228_p4 }
   0xe   :  { %p231_p7 = pnand %p230_p6, %p224_p3 }
  0x10   :  { %234 = shalt.err (!%p231_p7)
}
  0x11   :  { %s286_s22 = smov 128   ;;  %s287_s23 = smov 8  }
  0x12   :  { %22 = dma.hbm_to_vmem [thread:$0]  %s364_s0, 256, %s17_s13, [#allocation3], %s286_s22, %s286_s22, %s287_s23  }
  0x13   :  { %s288_s26 = smov [#allocation5]   ;;  %s235_s30 = scalar_lea.hbm %s365_s1, 256 }
  0x14   :  { %s28_s27 = sshll.u32 %s288_s26, 4  ;;  %p236_p8 = scmp.ne.s32.totalorder %s365_s1, %s235_s30  ;;  %s29_s27 = int_to_ptr.vmem [resolvable:$true] %s28_s27 }
  0x15   :  { %p239_p9 = scmp.lt.u32.totalorder %s235_s30, %s365_s1 }
  0x17   :  { %p241_p10 = pnand %p239_p9, %p236_p8 }
  0x19   :  { %244 = shalt.err (!%p241_p10)
}
  0x1a   :  { %s245_s8 = scalar_lea.vmem %s29_s27, 256  ;;  %p250_p12 = scmp.lt.s32.totalorder %s29_s27, %s29_s27 }
  0x1b   :  { %p246_p11 = scmp.ne.s32.totalorder %s29_s27, %s245_s8  ;;  %p251_p13 = scmp.lt.s32.totalorder %s245_s8, %s245_s8 }
  0x1d   :  { %p252_p0 = por %p251_p13, %p250_p12 }
  0x1f   :  { %p253_p1 = pnand %p252_p0, %p246_p11 }
  0x21   :  { %256 = shalt.err (!%p253_p1)
}
  0x22   :  { %34 = dma.hbm_to_vmem [thread:$0]  %s365_s1, 256, %s29_s27, [#allocation6], %s286_s22, %s286_s22, %s287_s23  }
  0x23   :  { %279 = dma.done.wait [#allocation3], 256  }
  0x24   :  { %280 = vsyncadd [#allocation3], 4294967040 }
  0x25   :  { %281 = dma.done.wait [#allocation6], 256  }
  0x26   :  { %282 = vsyncadd [#allocation6], 4294967040  ;;  %vm54_vm0 = vcmask 130048   ;;  %v45_v0 = vld [vmem:[#allocation5] sm:$0xff]  ;;  %v46_v1 = vld [vmem:[#allocation5 + $0x8] sm:$0xff]  ;;  %vm138_vm1 = vcmask 138240   ;;  %v161_v18 = vlaneseq }
  0x27   :  { %v43_v2 = vld [vmem:[#allocation2] sm:$0xff]  ;;  %v200_v3 = vpack.c.bf16 %v46_v1, %v45_v0  ;;  %v44_v4 = vld [vmem:[#allocation2 + $0x8] sm:$0xff]  ;;  %s289_s1 = smov [#allocation7]  }
  0x28   :  { %197 = vmatprep.mubr.msk.f32.mxu0 %vm54_vm0, %v43_v2  ;;  %v186_v5 = vld [vmem:[%s366_s2] ss:$0 sm:$0xff]  ;;  %v162_v19 = vand.u32 127, %v161_v18  ;;  %s173_s2 = sshll.u32 %s289_s1, 4  ;;  %s174_s2 = int_to_ptr.vmem [resolvable:$true] %s173_s2 }
  0x29   :  { %201 = vmatprep.subr.bf16.mxu0 %v200_v3  ;;  %s257_s12 = scalar_lea.vmem %s174_s2, 256  ;;  %p262_p3 = scmp.lt.s32.totalorder %s174_s2, %s174_s2 }
  0x2a   :  { %203 = vmatpush3.bf16.msra.mxu0 %v200_v3  ;;  %vm163_vm3 = vcmp.eq.s32.totalorder %v162_v19, 0  ;;  %p258_p2 = scmp.ne.s32.totalorder %s174_s2, %s257_s12  ;;  %p263_p4 = scmp.lt.s32.totalorder %s257_s12, %s257_s12 }
  0x2c   :  { %p264_p5 = por %p263_p4, %p262_p3 }
  0x2d   :  { %198 = vmatmul.mubr.msk.f32.vlgmr.msra.gmra.mrb[0].mxu0 %vm54_vm0, %v44_v4 }
  0x2e   :  { %p265_p6 = pnand %p264_p5, %p258_p2 }
 0x100   :  { %v199_v6 = vpop.f32.mrb[0].mxu0 }
 0x101   :  { %v127_v7 = vpop.f32.mrb[1].mxu0  ;;  %v133_v8 = vadd.f32 %v199_v6, %v186_v5 }
 0x102   :  { %v128_v9 = vadd.f32 %v186_v5, %v127_v7 }
 0x103   :  { %v137_v12 = vmul.f32 %v133_v8, %v133_v8 }
 0x104   :  { %v136_v10 = vmul.f32 %v128_v9, %v128_v9 }
 0x105   :  { %v142_v13 = vsel %vm138_vm1, %v137_v12, 0.0 }
 0x106   :  { %v139_v11 = vsel %vm138_vm1, %v136_v10, 0.0 }
 0x107   :  { %140 = vadd.xlane.f32.xlu0 %v139_v11 }
 0x10b   :  { %143 = vadd.xlane.f32.xlu0 %v142_v13 }
 0x194   :  { %v141_v14 = vpop.xlane.xlu0 %140 }
 0x195   :  { %v145_v15 = vadd.f32 1.0, %v141_v14 }
 0x197   :  { %209 = vrsqrt.f32 %v145_v15  ;;  %vm149_vm2 = vcmp.eq.f32.partialorder %v145_v15, inf  ;;  %v152_v22 = vand.u32 2147483648, %v145_v15  ;;  %vm151_vm4 = vcmp.eq.f32.partialorder %v145_v15, 0.0 }
 0x198   :  { %v144_v16 = vpop.xlane.xlu0 %143 }
 0x199   :  { %v146_v17 = vadd.f32 1.0, %v144_v16 }
 0x19b   :  { %211 = vrsqrt.f32 %v146_v17  ;;  %vm156_vm5 = vcmp.eq.f32.partialorder %v146_v17, inf  ;;  %v159_v28 = vand.u32 2147483648, %v146_v17  ;;  %vm158_vm6 = vcmp.eq.f32.partialorder %v146_v17, 0.0 }
 0x1a1   :  { %v210_v20 = vpop.eup %209 }
 0x1a2   :  { %v148_v21 = vmul.f32 %v210_v20, %v145_v15 }
 0x1a4   :  { %v150_v23 = vsel %vm149_vm2, %v145_v15, %v148_v21 }
 0x1a5   :  { %v212_v24 = vpop.eup %211  ;;  %v153_v25 = vsel %vm151_vm4, %v152_v22, %v150_v23 }
 0x1a6   :  { %v155_v26 = vmul.f32 %v212_v24, %v146_v17  ;;  %v164_v27 = vsel %vm163_vm3, %v153_v25, %v128_v9 }
 0x1a7   :  { %166 = vst.msk [vmem:[#allocation7] sm:$0xff] %vm138_vm1, %v164_v27 }
 0x1a8   :  { %v157_v29 = vsel %vm156_vm5, %v146_v17, %v155_v26 }
 0x1a9   :  { %v160_v30 = vsel %vm158_vm6, %v159_v28, %v157_v29 }
 0x1aa   :  { %v165_v31 = vsel %vm163_vm3, %v160_v30, %v133_v8 }
 0x1ab   :  { %167 = vst.msk [vmem:[#allocation7 + $0x8] sm:$0xff] %vm138_vm1, %v165_v31 }
 0x1ac   :  { %268 = shalt.err (!%p265_p6)
}
 0x1ad   :  { %s269_s15 = scalar_lea.hbm %s367_s3, 256 }
 0x1ae   :  { %p270_p7 = scmp.ne.s32.totalorder %s367_s3, %s269_s15  ;;  %p273_p8 = scmp.lt.u32.totalorder %s269_s15, %s367_s3 }
 0x1b0   :  { %p275_p9 = pnand %p273_p8, %p270_p7 }
 0x1b2   :  { %278 = shalt.err (!%p275_p9)
}
 0x1b3   :  { %179 = dma.vmem_to_hbm [thread:$0]  %s174_s2, 256, %s367_s3, [#allocation4], %s286_s22, %s286_s22, %s287_s23  }
 0x1b4   :  { %283 = dma.done.wait [#allocation4], 256  }
 0x1b5   :  { %284 = vsyncadd [#allocation4], 4294967040 }
 0x1b6   :  { %183 = vsyncpa [#allocation3], 1 }
 0x1b7   :  { %184 = vsyncpa [#allocation6], 1 }
 0x1b8   :  { %185 = vsyncpa [#allocation4], 1 }

</bundles_post_ra>
